<compile_context>
chip_gen: v5e
topology: v5e:2x2
jax: 0.10.0
libtpu: 0.0.40
codegen_flags: <defaults>
</compile_context>

<pallas_src>
import jax
import jax.numpy as jnp
from jax.experimental import pallas as pl
from jax.experimental.pallas import tpu as pltpu


# ----------------------------- small helpers --------------------------------
def _cdiv(a, b):
    return -(-a // b)


def _round_up(x, m):
    return _cdiv(x, m) * m


def _pad2d(a, rows, cols):
    pr, pc = rows - a.shape[0], cols - a.shape[1]
    if pr == 0 and pc == 0:
        return a
    return jnp.pad(a, ((0, pr), (0, pc)))


def _vmem_capacity_bytes():
    """Per-core VMEM capacity; conservative 64 MiB (v7x) fallback."""
    try:
        cap = int(pltpu.get_tpu_info().vmem_capacity_bytes)
        if cap > 0:
            return cap
    except Exception:
        pass
    return 64 << 20


def _vmem_bytes(bm, bk, h_pad, n_pad):
    """Honest estimate of what the pipeline allocates (everything 2-buffered)."""
    return (
        2 * bm * bk * 4          # x tile, f32, double-buffered
        + 2 * bk * h_pad * 2     # w1 tile, bf16, double-buffered
        + 2 * h_pad * n_pad * 2  # w2 (constant block, Pallas still allocates 2)
        + 2 * 8 * h_pad * 4      # b1 (sublane-padded), 2 buffers
        + 2 * 8 * n_pad * 4      # b2
        + 2 * bm * n_pad * 4     # out tile, f32, double-buffered
        + bm * h_pad * 4         # f32 accumulator scratch
    )


def _choose_batch_tiling(B, bm_cap=256):
    """Tile-count-derived batch tile: padding <= 7 rows; >=2 tiles when B allows
    so both v7x TensorCores get work on the 'parallel' batch axis."""
    B_a = _round_up(max(B, 1), 8)
    nb = max(1, _cdiv(B_a, bm_cap))
    if nb < 2 and B_a >= 16:
        nb = 2
    bm = _round_up(_cdiv(B_a, nb), 8)
    return bm, nb * bm


def _choose_k_tiling(K, h_pad, n_pad, bm_worst, usable):
    """Prefer nk == 1 (w1 resident); otherwise the fewest K tiles that fit VMEM."""
    K_a = _round_up(K, 128)
    nk = 1
    while True:
        bk = _round_up(_cdiv(K_a, nk), 128)
        if _vmem_bytes(bm_worst, bk, h_pad, n_pad) <= usable or bk == 128:
            break
        nk += 1
    # Note: if even bk == 128 overflows (very large hidden), we still proceed with
    # the largest legal vmem_limit; a hidden-dimension-tiled path is not implemented.
    return bk, nk * bk


# --------------------------------- kernel -----------------------------------
def mlp_kernel(x_ref, w1_ref, b1_ref, w2_ref, b2_ref, o_ref, acc_ref):
    """One (batch-tile, K-tile) grid step of Linear + ReLU -> Linear."""
    k = pl.program_id(1)

    @pl.when(k == 0)
    def _():
        acc_ref[...] = jnp.zeros_like(acc_ref)

    # In-kernel bf16 cast of the f32 activation (VPU, hides under the MXU);
    # f32 accumulation on the MXU.
    x_bf16 = x_ref[...].astype(jnp.bfloat16)
    acc_ref[...] += jnp.dot(x_bf16, w1_ref[...], preferred_element_type=jnp.float32)

    @pl.when(k == pl.num_programs(1) - 1)
    def _():
        # Bias + ReLU in f32 (Dropout(p=0.0) is the identity).
        h = jnp.maximum(acc_ref[...] + b1_ref[...], 0.0)
        # Classifier matmul: bf16 MXU inputs, f32 accumulation, lane-dense store.
        out = jnp.dot(
            h.astype(jnp.bfloat16), w2_ref[...],
            preferred_element_type=jnp.float32,
        )
        o_ref[...] = (out + b2_ref[...]).astype(o_ref.dtype)


# ----------------------------- parameter prep -------------------------------
def prepare_params(w1, b1, w2, b2, *, bm_cap=256):
    """Pad + bf16-cast the weights ONCE (hoisted out of the per-forward path).

    w1: (input_size, hidden), w2: (hidden, out_features); biases 1-D.
    """
    input_size, hidden = w1.shape
    out_features = w2.shape[1]
    h_pad = _round_up(hidden, 128)
    n_pad = _round_up(out_features, 128)     # lane-dense (unmasked) output stores

    capacity = _vmem_capacity_bytes()
    usable = int(capacity * 0.8)             # headroom for compiler-internal scratch

    # K tiling is chosen against the worst-case batch tile so any bm <= bm_cap fits.
    bk, k_pad = _choose_k_tiling(input_size, h_pad, n_pad, bm_cap, usable)

    return dict(
        w1=_pad2d(w1, k_pad, h_pad).astype(jnp.bfloat16),
        b1=jnp.pad(b1, (0, h_pad - hidden)).reshape(1, h_pad).astype(jnp.float32),
        w2=_pad2d(w2, h_pad, n_pad).astype(jnp.bfloat16),
        b2=jnp.pad(b2, (0, n_pad - out_features)).reshape(1, n_pad).astype(jnp.float32),
        input_size=input_size,
        hidden=hidden,
        out_features=out_features,
        h_pad=h_pad,
        n_pad=n_pad,
        k_pad=k_pad,
        bk=bk,
        bm_cap=bm_cap,
        vmem_capacity=capacity,
    )


# --------------------------------- forward ----------------------------------
def incremental_mlp_forward(x, params):
    """x: (B, C, H, W) f32 -> (B, out_features) f32."""
    B = x.shape[0]
    input_size = params["input_size"]
    out_features = params["out_features"]
    h_pad, n_pad = params["h_pad"], params["n_pad"]
    k_pad, bk = params["k_pad"], params["bk"]
    w1_p, b1_p = params["w1"], params["b1"]
    w2_p, b2_p = params["w2"], params["b2"]

    # Glue: contiguous flatten, matches x.view(B, input_size).
    x_flat = x.reshape(B, input_size)

    usable = int(params["vmem_capacity"] * 0.8)
    bm, B_pad = _choose_batch_tiling(B, bm_cap=params["bm_cap"])
    # Shrink the batch tile if the (already K-tiled) working set is still over
    # budget (very large hidden on v7x's 64 MiB).
    while bm > 8 and _vmem_bytes(bm, bk, h_pad, n_pad) > usable:
        bm = max(8, _round_up(bm // 2, 8))
        B_pad = _round_up(max(B, 1), bm)

    nb = B_pad // bm
    nk = k_pad // bk

    # Activation stays f32 in HBM; zero padding is exact (padded K columns
    # contribute 0; padded rows/output columns are sliced away below).
    x_p = _pad2d(x_flat, B_pad, k_pad)

    vmem_est = _vmem_bytes(bm, bk, h_pad, n_pad)
    vmem_limit = int(min(max(int(vmem_est * 1.25), 4 << 20),
                         int(params["vmem_capacity"] * 0.9)))

    # Honest traffic: w1 streamed once when resident (nk == 1), else once per batch tile.
    w1_reads = 1 if nk == 1 else nb
    cost = pl.CostEstimate(
        flops=2 * B_pad * (k_pad * h_pad + h_pad * n_pad),
        transcendentals=0,
        bytes_accessed=int(
            x_p.size * 4
            + w1_reads * w1_p.size * 2
            + w2_p.size * 2
            + b1_p.size * 4
            + b2_p.size * 4
            + B_pad * n_pad * 4
        ),
    )

    grid_spec = pltpu.PrefetchScalarGridSpec(
        num_scalar_prefetch=0,
        grid=(nb, nk),                                          # K last (reduction)
        in_specs=[
            pl.BlockSpec((bm, bk), lambda i, k: (i, k)),        # x (f32)
            pl.BlockSpec((bk, h_pad), lambda i, k: (k, 0)),     # w1 (bf16; resident if nk==1)
            pl.BlockSpec((1, h_pad), lambda i, k: (0, 0)),      # b1 (f32, constant block)
            pl.BlockSpec((h_pad, n_pad), lambda i, k: (0, 0)),  # w2 (bf16, constant block)
            pl.BlockSpec((1, n_pad), lambda i, k: (0, 0)),      # b2 (f32, constant block)
        ],
        out_specs=pl.BlockSpec((bm, n_pad), lambda i, k: (i, 0)),
        scratch_shapes=[pltpu.VMEM((bm, h_pad), jnp.float32)],  # f32 layer-1 accumulator
    )

    out_pad = pl.pallas_call(
        mlp_kernel,
        out_shape=jax.ShapeDtypeStruct((B_pad, n_pad), jnp.float32),
        grid_spec=grid_spec,
        compiler_params=pltpu.CompilerParams(
            # Batch axis "parallel" -> Mosaic may shard it across megacore TCs;
            # K axis is the reduction -> "arbitrary".
            dimension_semantics=("parallel", "arbitrary"),
            vmem_limit_bytes=vmem_limit,
        ),
        cost_estimate=cost,
    )(x_p, w1_p, b1_p, w2_p, b2_p)

    return out_pad[:B, :out_features]


# ------------------------------- reference ----------------------------------
def reference_forward(x, w1, b1, w2, b2):
    B = x.shape[0]
    xf = x.reshape(B, w1.shape[0])
    h = jnp.maximum(xf @ w1 + b1, 0.0)
    return h @ w2 + b2


# ----------------------------------- main ------------------------------------
if __name__ == "__main__":
    # Small shapes consistent with the module's forward:
    #   batch=2, image (1, 16, 16) -> input_size=256, hidden_size=128,
    #   initial_out_features=2, hidden_layers=1, drop_rate=0.0.
    B, C, H, W = 2, 1, 16, 16
    input_size = C * H * W
    hidden_size = 128
    out_features = 2

    key = jax.random.PRNGKey(0)
    kx, k1, k2, k3, k4 = jax.random.split(key, 5)

    x = jax.random.normal(kx, (B, C, H, W), dtype=jnp.float32)
    # Deterministic parameter init (shapes per nn.Linear; stored as (in, out)).
    w1 = jax.random.normal(k1, (input_size, hidden_size), dtype=jnp.float32) * 0.05
    b1 = jax.random.normal(k2, (hidden_size,), dtype=jnp.float32) * 0.05
    w2 = jax.random.normal(k3, (hidden_size, out_features), dtype=jnp.float32) * 0.05
    b2 = jax.random.normal(k4, (out_features,), dtype=jnp.float32) * 0.05

    # One-time weight pad + bf16 cast (hoisted out of the per-call path).
    params = prepare_params(w1, b1, w2, b2)

    out = incremental_mlp_forward(x, params)
    out = jax.block_until_ready(out)

    ref = reference_forward(x, w1, b1, w2, b2)
    assert out.shape == (B, out_features)
    # bf16 MXU inputs with f32 accumulation -> slightly looser tolerance vs f32 ref.
    assert jnp.allclose(out, ref, atol=3e-2, rtol=3e-2)

    print("KERNEL_OK")
</pallas_src>

<mosaic_0001>
module attributes {stable_mosaic.version = 11 : i64} {
  func.func @mlp_kernel(%arg0: i32, %arg1: i32, %arg2: memref<8x256xf32, #tpu.memory_space<vmem>>, %arg3: memref<256x128xbf16, #tpu.memory_space<vmem>>, %arg4: memref<1x128xf32, #tpu.memory_space<vmem>>, %arg5: memref<128x128xbf16, #tpu.memory_space<vmem>>, %arg6: memref<1x128xf32, #tpu.memory_space<vmem>>, %arg7: memref<8x128xf32, #tpu.memory_space<vmem>>, %arg8: memref<8x128xf32, #tpu.memory_space<vmem>>) attributes {dimension_semantics = [#tpu.dimension_semantics<parallel>, #tpu.dimension_semantics<arbitrary>], iteration_bounds = array<i64: 1, 1>, scalar_prefetch = 0 : i64, scratch_operands = 1 : i64, tpu.core_type = #tpu.core_type<tc>, window_params = [{transform_indices = @transform_0, window_bounds = array<i64: 8, 256>}, {transform_indices = @transform_1, window_bounds = array<i64: 256, 128>}, {pipeline_mode = #tpu.pipeline_mode<synchronous>, transform_indices = @transform_2, window_bounds = array<i64: 1, 128>}, {pipeline_mode = #tpu.pipeline_mode<synchronous>, transform_indices = @transform_3, window_bounds = array<i64: 128, 128>}, {pipeline_mode = #tpu.pipeline_mode<synchronous>, transform_indices = @transform_4, window_bounds = array<i64: 1, 128>}, {transform_indices = @transform_5, window_bounds = array<i64: 8, 128>}]} {
    %c0_i32 = arith.constant 0 : i32
    %0 = arith.cmpi eq, %arg1, %c0_i32 : i32
    %1 = arith.extui %0 : i1 to i32
    %c0_i32_0 = arith.constant 0 : i32
    %2 = arith.cmpi ne, %1, %c0_i32_0 : i32
    scf.if %2 {
      %cst_10 = arith.constant 0.000000e+00 : f32
      %13 = vector.broadcast %cst_10 : f32 to vector<8x128xf32>
      %c0_11 = arith.constant 0 : index
      %c0_12 = arith.constant 0 : index
      %14 = vector.load %arg8[%c0_11, %c0_12] : memref<8x128xf32, #tpu.memory_space<vmem>>, vector<8x128xf32>
      tpu.vector_store %arg8[%c0_11, %c0_12], %13 {strides = array<i32>} : memref<8x128xf32, #tpu.memory_space<vmem>>, vector<8x128xf32>,
    } else {
    }
    %c0 = arith.constant 0 : index
    %c0_1 = arith.constant 0 : index
    %3 = vector.load %arg2[%c0, %c0_1] : memref<8x256xf32, #tpu.memory_space<vmem>>, vector<8x256xf32>
    %4 = arith.truncf %3 : vector<8x256xf32> to vector<8x256xbf16>
    %c0_2 = arith.constant 0 : index
    %c0_3 = arith.constant 0 : index
    %5 = vector.load %arg8[%c0_2, %c0_3] : memref<8x128xf32, #tpu.memory_space<vmem>>, vector<8x128xf32>
    %c0_4 = arith.constant 0 : index
    %c0_5 = arith.constant 0 : index
    %6 = vector.load %arg3[%c0_4, %c0_5] : memref<256x128xbf16, #tpu.memory_space<vmem>>, vector<256x128xbf16>
    %cst = arith.constant dense<0.000000e+00> : vector<8x128xf32>
    %7 = tpu.matmul %4, %6, %cst {dimension_numbers = #tpu.dot_dimension_numbers<[1], [0], [0], [1], [0, 0, 1, 1], [], []>} : vector<8x256xbf16>, vector<256x128xbf16>, vector<8x128xf32> -> vector<8x128xf32>
    %8 = arith.addf %5, %7 : vector<8x128xf32>
    %c0_6 = arith.constant 0 : index
    %c0_7 = arith.constant 0 : index
    %9 = vector.load %arg8[%c0_6, %c0_7] : memref<8x128xf32, #tpu.memory_space<vmem>>, vector<8x128xf32>
    tpu.vector_store %arg8[%c0_6, %c0_7], %8 {strides = array<i32>} : memref<8x128xf32, #tpu.memory_space<vmem>>, vector<8x128xf32>,
    %c0_i32_8 = arith.constant 0 : i32
    %10 = arith.cmpi eq, %arg1, %c0_i32_8 : i32
    %11 = arith.extui %10 : i1 to i32
    %c0_i32_9 = arith.constant 0 : i32
    %12 = arith.cmpi ne, %11, %c0_i32_9 : i32
    scf.if %12 {
      %c0_10 = arith.constant 0 : index
      %c0_11 = arith.constant 0 : index
      %13 = vector.load %arg8[%c0_10, %c0_11] : memref<8x128xf32, #tpu.memory_space<vmem>>, vector<8x128xf32>
      %c0_12 = arith.constant 0 : index
      %c0_13 = arith.constant 0 : index
      %14 = vector.load %arg4[%c0_12, %c0_13] : memref<1x128xf32, #tpu.memory_space<vmem>>, vector<1x128xf32>
      %15 = vector.broadcast %14 : vector<1x128xf32> to vector<8x128xf32>
      %16 = arith.addf %13, %15 : vector<8x128xf32>
      %cst_14 = arith.constant 0.000000e+00 : f32
      %17 = vector.broadcast %cst_14 : f32 to vector<8x128xf32>
      %18 = arith.maximumf %16, %17 : vector<8x128xf32>
      %19 = arith.truncf %18 : vector<8x128xf32> to vector<8x128xbf16>
      %c0_15 = arith.constant 0 : index
      %c0_16 = arith.constant 0 : index
      %20 = vector.load %arg5[%c0_15, %c0_16] : memref<128x128xbf16, #tpu.memory_space<vmem>>, vector<128x128xbf16>
      %cst_17 = arith.constant dense<0.000000e+00> : vector<8x128xf32>
      %21 = tpu.matmul %19, %20, %cst_17 {dimension_numbers = #tpu.dot_dimension_numbers<[1], [0], [0], [1], [0, 0, 1, 1], [], []>} : vector<8x128xbf16>, vector<128x128xbf16>, vector<8x128xf32> -> vector<8x128xf32>
      %c0_18 = arith.constant 0 : index
      %c0_19 = arith.constant 0 : index
      %22 = vector.load %arg6[%c0_18, %c0_19] : memref<1x128xf32, #tpu.memory_space<vmem>>, vector<1x128xf32>
      %23 = vector.broadcast %22 : vector<1x128xf32> to vector<8x128xf32>
      %24 = arith.addf %21, %23 : vector<8x128xf32>
      %c0_20 = arith.constant 0 : index
      %c0_21 = arith.constant 0 : index
      %25 = vector.load %arg7[%c0_20, %c0_21] : memref<8x128xf32, #tpu.memory_space<vmem>>, vector<8x128xf32>
      tpu.vector_store %arg7[%c0_20, %c0_21], %24 {strides = array<i32>} : memref<8x128xf32, #tpu.memory_space<vmem>>, vector<8x128xf32>,
    } else {
    }
    return
  }
  func.func @transform_0(%arg0: i32, %arg1: i32) -> (i32, i32) {
    %c0_i32 = arith.constant 0 : i32
    return %arg0, %arg1 : i32, i32
  }
  func.func @transform_1(%arg0: i32, %arg1: i32) -> (i32, i32) {
    %c0_i32 = arith.constant 0 : i32
    %c0_i32_0 = arith.constant 0 : i32
    return %arg1, %c0_i32 : i32, i32
  }
  func.func @transform_2(%arg0: i32, %arg1: i32) -> (i32, i32) {
    %c0_i32 = arith.constant 0 : i32
    %c0_i32_0 = arith.constant 0 : i32
    %c0_i32_1 = arith.constant 0 : i32
    return %c0_i32, %c0_i32_0 : i32, i32
  }
  func.func @transform_3(%arg0: i32, %arg1: i32) -> (i32, i32) {
    %c0_i32 = arith.constant 0 : i32
    %c0_i32_0 = arith.constant 0 : i32
    %c0_i32_1 = arith.constant 0 : i32
    return %c0_i32, %c0_i32_0 : i32, i32
  }
  func.func @transform_4(%arg0: i32, %arg1: i32) -> (i32, i32) {
    %c0_i32 = arith.constant 0 : i32
    %c0_i32_0 = arith.constant 0 : i32
    %c0_i32_1 = arith.constant 0 : i32
    return %c0_i32, %c0_i32_0 : i32, i32
  }
  func.func @transform_5(%arg0: i32, %arg1: i32) -> (i32, i32) {
    %c0_i32 = arith.constant 0 : i32
    %c0_i32_0 = arith.constant 0 : i32
    return %arg0, %c0_i32 : i32, i32
  }
}

</mosaic_0001>

<bundles_post_ra>
// kernel: tpu_custom_call.1
= control target key start
LH: loop header
LB: loop body
LE: loop exit
PB: predicated region body
PF: predicated region fallthrough
CT: control target
= control target key end

     0   :  { %10 = vsyncpa [#allocation4], 0  ;;  %s627_s0 = inlined_call_operand.hbm [shape: f32[8,256], index: 0, kind: input, shape index: {}]   ;;  %s628_s1 = inlined_call_operand.hbm [shape: bf16[256,128], index: 1, kind: input, shape index: {}]   ;;  %s629_s2 = inlined_call_operand.vmem [shape: f32[1,128], index: 2, kind: input, shape index: {}]   ;;  %s630_s3 = inlined_call_operand.hbm [shape: bf16[128,128], index: 3, kind: input, shape index: {}]   ;;  %s631_s4 = inlined_call_operand.vmem [shape: f32[1,128], index: 4, kind: input, shape index: {}]   ;;  %s632_s5 = inlined_call_operand.hbm [shape: f32[8,128], index: 5, kind: output, shape index: {}]  }
   0x1   :  { %11 = vsyncpa [#allocation7], 0  ;;  %s28_s20 = sshll.u32 %s628_s1, 4  ;;  %s29_s20 = int_to_ptr.hbm [resolvable:$true] %s28_s20 }
   0x2   :  { %12 = vsyncpa [#allocation5], 0  ;;  %s573_s21 = smov [#allocation6]   ;;  %s18_s25 = sshll.u32 %s627_s0, 4  ;;  %s19_s25 = int_to_ptr.hbm [resolvable:$true] %s18_s25 }
   0x3   :  { %s30_s22 = sshll.u32 %s573_s21, 4  ;;  %s574_s26 = smov 64   ;;  %s31_s22 = int_to_ptr.vmem [resolvable:$true] %s30_s22 }
   0x4   :  { %s575_s27 = smov 4   ;;  %s576_s28 = smov [#allocation3]  }
   0x5   :  { %36 = dma.hbm_to_vmem [thread:$0]  %s29_s20, 2048, %s31_s22, [#allocation7], %s574_s26, %s574_s26, %s575_s27  }
   0x6   :  { %s20_s29 = sshll.u32 %s576_s28, 4  ;;  %s43_s7 = sshll.u32 %s630_s3, 4  ;;  %s21_s29 = int_to_ptr.vmem [resolvable:$true] %s20_s29  ;;  %s44_s7 = int_to_ptr.hbm [resolvable:$true] %s43_s7 }
   0x7   :  { %23 = dma.hbm_to_vmem [thread:$0]  %s19_s25, 256, %s21_s29, [#allocation4]  }
   0x8   :  { %s577_s1 = smov [#allocation8]  }
   0x9   :  { %s45_s8 = sshll.u32 %s577_s1, 4  ;;  %s46_s8 = int_to_ptr.vmem [resolvable:$true] %s45_s8 }
   0xa   :  { %51 = dma.hbm_to_vmem [thread:$0]  %s44_s7, 1024, %s46_s8, [#allocation7], %s574_s26, %s574_s26, %s575_s27  }
   0xb   :  { %567 = dma.done.wait [#allocation4], 256  }
   0xc   :  { %568 = vsyncadd [#allocation4], 4294967040 }
   0xd   :  { %569 = dma.done.wait [#allocation7], 3072  }
   0xe   :  { %570 = vsyncadd [#allocation7], 4294964224  ;;  %v446_v0 = vld [vmem:[#allocation6 + $0x38] sm:$0xff]  ;;  %v445_v2 = vld [vmem:[#allocation6 + $0x30] sm:$0xff]  ;;  %s578_s11 = smov [#allocation9]   ;;  %s332_s15 = sshll.u32 %s632_s5, 4  ;;  %s333_s15 = int_to_ptr.hbm [resolvable:$true] %s332_s15 }
   0xf   :  { %v454_v1 = vld [vmem:[#allocation6 + $0x78] sm:$0xff]  ;;  %204 = vmatpush.bf16.msra.mxu0 %v446_v0  ;;  %v453_v3 = vld [vmem:[#allocation6 + $0x70] sm:$0xff]  ;;  %v444_v4 = vld [vmem:[#allocation6 + $0x28] sm:$0xff]  ;;  %s330_s12 = sshll.u32 %s578_s11, 4  ;;  %s331_s12 = int_to_ptr.vmem [resolvable:$true] %s330_s12 }
  0x10   :  { %217 = vmatpush.bf16.msra.mxu1 %v454_v1  ;;  %v452_v5 = vld [vmem:[#allocation6 + $0x68] sm:$0xff]  ;;  %v462_v6 = vld [vmem:[#allocation8 + $0x38] sm:$0xff]  ;;  %v461_v7 = vld [vmem:[#allocation8 + $0x30] sm:$0xff] }
  0x11   :  { %311 = vmatpush.bf16.msra.mxu2 %v462_v6  ;;  %v443_v8 = vld [vmem:[#allocation6 + $0x20] sm:$0xff]  ;;  %v460_v10 = vld [vmem:[#allocation8 + $0x28] sm:$0xff]  ;;  %v442_v11 = vld [vmem:[#allocation6 + $0x18] sm:$0xff] }
  0x12   :  { %v451_v9 = vld [vmem:[#allocation6 + $0x60] sm:$0xff]  ;;  %v450_v12 = vld [vmem:[#allocation6 + $0x58] sm:$0xff]  ;;  %v441_v14 = vld [vmem:[#allocation6 + $0x10] sm:$0xff] }
  0x13   :  { %205 = vmatpush.bf16.msra.mxu0 %v445_v2  ;;  %v459_v13 = vld [vmem:[#allocation8 + $0x20] sm:$0xff]  ;;  %v449_v15 = vld [vmem:[#allocation6 + $0x50] sm:$0xff]  ;;  %v458_v16 = vld [vmem:[#allocation8 + $0x18] sm:$0xff] }
  0x14   :  { %218 = vmatpush.bf16.msra.mxu1 %v453_v3  ;;  %v440_v17 = vld [vmem:[#allocation6 + $0x8] sm:$0xff]  ;;  %v457_v19 = vld [vmem:[#allocation8 + $0x10] sm:$0xff]  ;;  %v439_v20 = vld [vmem:[#allocation6] sm:$0xff] }
  0x15   :  { %312 = vmatpush.bf16.msra.mxu2 %v461_v7  ;;  %v448_v18 = vld [vmem:[#allocation6 + $0x48] sm:$0xff]  ;;  %v447_v21 = vld [vmem:[#allocation6 + $0x40] sm:$0xff]  ;;  %v71_v22 = vld [vmem:[#allocation3] sm:$0xff] }
  0x16   :  { %v72_v23 = vld [vmem:[#allocation3 + $0x8] sm:$0xff]  ;;  %v73_v24 = vpack.c.bf16 %v71_v22, %v71_v22  ;;  %v456_v26 = vld [vmem:[#allocation8 + $0x8] sm:$0xff]  ;;  %v455_v27 = vld [vmem:[#allocation8] sm:$0xff] }
  0x17   :  { %206 = vmatpush.bf16.msra.mxu0 %v444_v4  ;;  %v74_v25 = vpack.c.bf16 %v72_v23, %v72_v23  ;;  %v469_v28 = vld [vmem:[%s629_s2] ss:$0 sm:$0xff] }
  0x18   :  { %219 = vmatpush.bf16.msra.mxu1 %v452_v5  ;;  %v470_v37 = vld [vmem:[%s631_s4] ss:$0 sm:$0xff] }
  0x19   :  { %313 = vmatpush.bf16.msra.mxu2 %v460_v10 }
  0x1b   :  { %207 = vmatpush.bf16.msra.mxu0 %v443_v8 }
  0x1c   :  { %220 = vmatpush.bf16.msra.mxu1 %v451_v9 }
  0x1d   :  { %314 = vmatpush.bf16.msra.mxu2 %v459_v13 }
  0x1f   :  { %208 = vmatpush.bf16.msra.mxu0 %v442_v11 }
  0x20   :  { %221 = vmatpush.bf16.msra.mxu1 %v450_v12 }
  0x21   :  { %315 = vmatpush.bf16.msra.mxu2 %v458_v16 }
  0x23   :  { %209 = vmatpush.bf16.msra.mxu0 %v441_v14 }
  0x24   :  { %222 = vmatpush.bf16.msra.mxu1 %v449_v15 }
  0x25   :  { %316 = vmatpush.bf16.msra.mxu2 %v457_v19 }
  0x27   :  { %210 = vmatpush.bf16.msra.mxu0 %v440_v17 }
  0x28   :  { %223 = vmatpush.bf16.msra.mxu1 %v448_v18 }
  0x29   :  { %317 = vmatpush.bf16.msra.mxu2 %v456_v26 }
  0x2b   :  { %211 = vmatpush.bf16.msra.mxu0 %v439_v20 }
  0x2c   :  { %224 = vmatpush.bf16.msra.mxu1 %v447_v21 }
  0x2d   :  { %318 = vmatpush.bf16.msra.mxu2 %v455_v27 }
  0x2e   :  { %212 = vmatmul.bf16.vlgmr.msra.gmra.mxu0 %v73_v24 }
  0x2f   :  { %225 = vmatmul.bf16.vlgmr.msra.gmra.mxu1 %v74_v25 }
  0xab   :  { %v213_v29 = vpop.f32.mrf.mxu0 }
  0xac   :  { %v226_v30 = vpop.f32.mrf.mxu1 }
  0xad   :  { %v227_v31 = vadd.f32 %v226_v30, %v213_v29 }
  0xaf   :  { %v240_v32 = vadd.f32 %v469_v28, %v227_v31 }
  0xb1   :  { %v241_v33 = vmax.f32 %v240_v32, 0.0 }
  0xb3   :  { %v242_v34 = vpack.c.bf16 %v241_v33, %v241_v33  ;;  %v215_v35 = vpop.f32.mrf.mxu0 }
  0xb4   :  { %v228_v36 = vpop.f32.mrf.mxu1 }
  0xb5   :  { %319 = vmatmul.bf16.vlgmr.msra.gmra.mxu2 %v242_v34 }
 0x138   :  { %v320_v38 = vpop.f32.mrf.mxu2 }
 0x139   :  { %v321_v39 = vadd.f32 %v470_v37, %v320_v38 }
 0x13b   :  { %324 = vst [vmem:[#allocation9] sm:$0xff] %v321_v39 }
 0x13c   :  { %335 = dma.vmem_to_hbm [thread:$0]  %s331_s12, 128, %s333_s15, [#allocation5]  }
 0x140   :  { %v322_v40 = vpop.f32.mrf.mxu2 }
 0x141   :  { %571 = dma.done.wait [#allocation5], 128  }
 0x142   :  { %572 = vsyncadd [#allocation5], 4294967168 }
 0x143   :  { %340 = vsyncpa [#allocation4], 1 }
 0x144   :  { %341 = vsyncpa [#allocation7], 1 }
 0x145   :  { %342 = vsyncpa [#allocation5], 1 }

</bundles_post_ra>
